<compile_context>
chip_gen: v6e
topology: v6e:2x2x1
jax: 0.10.0
libtpu: 0.0.40
codegen_flags: <defaults>
</compile_context>

<pallas_src>
import jax
import jax.numpy as jnp
from jax.experimental import pallas as pl
from jax.experimental.pallas import tpu as pltpu

LANES = 128
_TARGET_BLOCK_BYTES = 4 * 1024 * 1024   # ~4 MiB per operand block
_VMEM_LIMIT_BYTES = 32 * 1024 * 1024    # explicit scoped-VMEM budget (v5e default is 16 MiB)


def _mul_kernel(x_ref, o_ref):
    x = x_ref[...]
    o_ref[...] = (x * x) * 2


def _sublane_multiple(dtype) -> int:
    itemsize = jnp.dtype(dtype).itemsize
    if itemsize >= 4:
        return 8
    if itemsize == 2:
        return 16
    return 32


def _compiler_params():
    return pltpu.CompilerParams(
        dimension_semantics=("parallel",),
        vmem_limit_bytes=_VMEM_LIMIT_BYTES,
    )


def _cost_estimate(n, itemsize):
    # read n elements + write n elements, 2 VPU multiplies per element.
    return pl.CostEstimate(flops=2 * n, transcendentals=0,
                           bytes_accessed=2 * n * itemsize)


def _mul_2d(x2d, rows, itemsize, dtype):
    """Aligned path: lane-dense (rows, 128) view, sublane-aligned row blocks."""
    sub = _sublane_multiple(dtype)
    block_rows = _TARGET_BLOCK_BYTES // (LANES * itemsize)
    block_rows = max(sub, (block_rows // sub) * sub)
    if rows <= block_rows:
        # Single full-extent block: always a legal BlockSpec, grid of 1.
        block_rows = rows
    grid = (pl.cdiv(rows, block_rows),)
    return pl.pallas_call(
        _mul_kernel,
        out_shape=jax.ShapeDtypeStruct((rows, LANES), dtype),
        grid=grid,
        in_specs=[pl.BlockSpec((block_rows, LANES), lambda i: (i, 0))],
        out_specs=pl.BlockSpec((block_rows, LANES), lambda i: (i, 0)),
        compiler_params=_compiler_params(),
        cost_estimate=_cost_estimate(rows * LANES, itemsize),
    )(x2d)


def _mul_1d(x1d, n, itemsize, dtype):
    """Unaligned path: flat 1-D view, Pallas masks the trailing partial block."""
    block_elems = _TARGET_BLOCK_BYTES // itemsize   # multiple of 8*128*packing
    if n <= block_elems:
        # Single full-extent block: always a legal BlockSpec, grid of 1.
        block_elems = n
    grid = (pl.cdiv(n, block_elems),)
    return pl.pallas_call(
        _mul_kernel,
        out_shape=jax.ShapeDtypeStruct((n,), dtype),
        grid=grid,
        in_specs=[pl.BlockSpec((block_elems,), lambda i: (i,))],
        out_specs=pl.BlockSpec((block_elems,), lambda i: (i,)),
        compiler_params=_compiler_params(),
        cost_estimate=_cost_estimate(n, itemsize),
    )(x1d)


def mul_forward(x: jax.Array) -> jax.Array:
    """Computes (x * x) * 2 elementwise via a tiled Pallas TPU kernel."""
    orig_shape = x.shape
    dtype = x.dtype
    n = x.size
    if n == 0:
        return x
    itemsize = jnp.dtype(dtype).itemsize

    x_flat = x.reshape(-1)  # contiguous reshape: free bitcast, no HBM copy
    if n % LANES == 0:
        rows = n // LANES
        out = _mul_2d(x_flat.reshape(rows, LANES), rows, itemsize, dtype)
    else:
        # Ragged size: stream the flat view directly; no jnp.pad / slice
        # round-trips through HBM.
        out = _mul_1d(x_flat, n, itemsize, dtype)
    return out.reshape(orig_shape)


if __name__ == "__main__":
    key = jax.random.PRNGKey(0)
    # Small NCHW input consistent with a generic elementwise module.
    x = jax.random.normal(key, (2, 4, 16, 16), dtype=jnp.float32)

    mul = jax.jit(mul_forward)
    y = mul(x)
    jax.block_until_ready(y)

    # Correctness check against plain JAX reference.
    y_ref = (x * x) * 2
    assert y.shape == x.shape and y.dtype == x.dtype
    assert jnp.allclose(y, y_ref, atol=1e-6, rtol=1e-6)

    print("KERNEL_OK")
</pallas_src>

<mosaic_0001>
module attributes {stable_mosaic.version = 11 : i64} {
  func.func @_mul_kernel(%arg0: i32, %arg1: memref<16x128xf32, #tpu.memory_space<vmem>>, %arg2: memref<16x128xf32, #tpu.memory_space<vmem>>) attributes {dimension_semantics = [#tpu.dimension_semantics<parallel>], iteration_bounds = array<i64: 1>, scalar_prefetch = 0 : i64, scratch_operands = 0 : i64, tpu.core_type = #tpu.core_type<tc>, window_params = [{transform_indices = @transform_0, window_bounds = array<i64: 16, 128>}, {transform_indices = @transform_1, window_bounds = array<i64: 16, 128>}]} {
    %c0 = arith.constant 0 : index
    %c0_0 = arith.constant 0 : index
    %0 = vector.load %arg1[%c0, %c0_0] : memref<16x128xf32, #tpu.memory_space<vmem>>, vector<16x128xf32>
    %1 = arith.mulf %0, %0 : vector<16x128xf32>
    %cst = arith.constant 2.000000e+00 : f32
    %2 = vector.broadcast %cst : f32 to vector<16x128xf32>
    %3 = arith.mulf %1, %2 : vector<16x128xf32>
    %c0_1 = arith.constant 0 : index
    %c0_2 = arith.constant 0 : index
    %4 = vector.load %arg2[%c0_1, %c0_2] : memref<16x128xf32, #tpu.memory_space<vmem>>, vector<16x128xf32>
    tpu.vector_store %arg2[%c0_1, %c0_2], %3 {strides = array<i32>} : memref<16x128xf32, #tpu.memory_space<vmem>>, vector<16x128xf32>,
    return
  }
  func.func @transform_0(%arg0: i32) -> (i32, i32) {
    %c0_i32 = arith.constant 0 : i32
    %c0_i32_0 = arith.constant 0 : i32
    return %arg0, %c0_i32 : i32, i32
  }
  func.func @transform_1(%arg0: i32) -> (i32, i32) {
    %c0_i32 = arith.constant 0 : i32
    %c0_i32_0 = arith.constant 0 : i32
    return %arg0, %c0_i32 : i32, i32
  }
}

</mosaic_0001>

<bundles_post_ra>
// kernel: mul_forward.1
= control target key start
LH: loop header
LB: loop body
LE: loop exit
PB: predicated region body
PF: predicated region fallthrough
CT: control target
= control target key end

     0   :  { %s42_s0 = inlined_call_operand.vmem [shape: f32[16,128], index: 0, kind: input, shape index: {}]   ;;  %s43_s1 = inlined_call_operand.vmem [shape: f32[16,128], index: 1, kind: output, shape index: {}]  }
   0x1   :  { %v8_v0 = vld [vmem:[%s42_s0] sm:$0xff]  ;;  %v9_v1 = vld [vmem:[%s42_s0 + $0x8] sm:$0xff] }
   0x2   :  { %v10_v2 = vmul.f32 %v8_v0, %v8_v0  ;;  %v11_v3 = vmul.f32 %v9_v1, %v9_v1 }
   0x4   :  { %v12_v4 = vmul.f32 2.0, %v10_v2  ;;  %v13_v5 = vmul.f32 2.0, %v11_v3 }
   0x6   :  { %14 = vst [vmem:[%s43_s1] sm:$0xff] %v12_v4  ;;  %15 = vst [vmem:[%s43_s1 + $0x8] sm:$0xff] %v13_v5 }

</bundles_post_ra>
